<compile_context>
chip_gen: v7x
topology: tpu7x:2x2x1
jax: 0.10.0
libtpu: 0.0.40
codegen_flags: <defaults>
</compile_context>

<pallas_src>
import functools

import jax
import jax.numpy as jnp
from jax import lax
from jax.experimental import pallas as pl
from jax.experimental.pallas import tpu as pltpu


_INV_SQRT2 = 0.7071067811865476


def _round_up(a, m):
    return ((a + m - 1) // m) * m


def _gelu(x, approx=False):
    if approx:
        # tanh-approximate gelu: tanh goes to the EUP slot (v6e/v7x), freeing
        # the VALU.  Numerics differ slightly from exact erf -> gated by flag.
        return 0.5 * x * (1.0 + jnp.tanh(0.7978845608028654 * (x + 0.044715 * x * x * x)))
    # exact-erf gelu, matching rosita's gelu(x) = 0.5*x*(1+erf(x/sqrt(2)))
    return 0.5 * x * (1.0 + lax.erf(x * _INV_SQRT2))


def imgfeat_head_kernel(
    x_ref,               # (tm, H)         f32 (cast to bf16 in-kernel)
    w1_ref, b1_ref,      # (H, H) bf16, (1, H) f32
    wcat_ref, bcat_ref,  # (H, C_pad) bf16, (1, C_pad) f32  fused feat|obj|attr head
    out_ref,             # (tm, C_pad)     f32 or bf16, lane-dense
    *, head_chunk, approx_gelu,
):
    w_dtype = w1_ref.dtype
    x = x_ref[...].astype(w_dtype)          # f32 HBM -> bf16 vregs (free VPU cast)

    # dense (HSIZE -> HSIZE): bf16 operands, f32 MXU accumulation, gelu in f32
    h = jnp.dot(x, w1_ref[...], preferred_element_type=jnp.float32) + b1_ref[...]
    h = _gelu(h, approx=approx_gelu)

    # LayerNorm over last dim, eps=1e-12 (biased variance, like torch LayerNorm).
    # The affine gamma/beta was folded into wcat/bcat at param-prep time.
    mean = jnp.mean(h, axis=-1, keepdims=True)
    c = h - mean
    var = jnp.mean(c * c, axis=-1, keepdims=True)
    n = (c * lax.rsqrt(var + 1e-12)).astype(w_dtype)

    # fused prediction-head matmul (feat | obj | attr, lane-padded), chunked
    # along output columns so the live f32 intermediate stays small on v7x.
    C_pad = out_ref.shape[-1]
    for c0 in range(0, C_pad, head_chunk):
        cw = min(head_chunk, C_pad - c0)
        out_ref[:, c0:c0 + cw] = (
            jnp.dot(n, wcat_ref[:, c0:c0 + cw], preferred_element_type=jnp.float32)
            + bcat_ref[:, c0:c0 + cw]
        ).astype(out_ref.dtype)


def prepare_imgfeat_head_params(params, *, matmul_dtype=jnp.bfloat16):
    """One-time (per parameter update) prep: fuse the three heads into one
    lane-padded weight, fold the LayerNorm affine into it (in f32), and cast
    the matmul operands to `matmul_dtype`.  Keeps this traffic out of the
    per-forward path."""
    H = params["w1"].shape[0]
    F = params["wf"].shape[1]
    O = params["wo"].shape[1]
    A = params["wa"].shape[1]
    C = F + O + A
    C_pad = _round_up(C, 128)

    wcat = jnp.concatenate([params["wf"], params["wo"], params["wa"]], axis=1).astype(jnp.float32)
    bcat = jnp.concatenate([params["bf"], params["bo"], params["ba"]], axis=1).astype(jnp.float32)

    # fold LayerNorm affine:  (n*gamma + beta) @ W + b  ==  n @ (diag(gamma) W) + (beta @ W + b)
    gamma = params["gamma"].astype(jnp.float32).reshape(H, 1)
    beta = params["beta"].astype(jnp.float32).reshape(1, H)
    bcat = bcat + beta @ wcat
    wcat = wcat * gamma

    if C_pad != C:
        wcat = jnp.pad(wcat, ((0, 0), (0, C_pad - C)))
        bcat = jnp.pad(bcat, ((0, 0), (0, C_pad - C)))

    return {
        "w1": params["w1"].astype(matmul_dtype),
        "b1": params["b1"].astype(jnp.float32).reshape(1, H),
        "wcat": wcat.astype(matmul_dtype),
        "bcat": bcat,
        "dims": (H, F, O, A, C, C_pad),
    }


def imgfeat_head(x, prep, *, tm=512, head_chunk=2048,
                 out_dtype=jnp.float32, approx_gelu=False):
    """x: (B, S, HSIZE) float32; prep: output of prepare_imgfeat_head_params.
    Returns (pred_feat, pred_obj, pred_attr) with dtype `out_dtype`."""
    H, F, O, A, C, C_pad = prep["dims"]
    B, S, Hx = x.shape
    assert Hx == H
    N = B * S
    x2 = x.reshape(N, H).astype(jnp.float32)   # no wrapper-side bf16 cast / padding

    wbytes = jnp.dtype(prep["w1"].dtype).itemsize
    out_bytes = jnp.dtype(out_dtype).itemsize

    # --- token tile: multiple of 16, shrunk only if VMEM working set exceeds a
    # budget that is legal on v7x (64 MiB/TC) as well as v5e/v6e (128 MiB). ---
    budget = 56 << 20

    def working_set(t):
        weights = (H * H + H * C_pad) * wbytes + (H + C_pad) * 4   # single-buffered residents
        return weights + 2 * t * H * 4 + 2 * t * C_pad * out_bytes + (4 << 20)

    tm_eff = max(16, min(_round_up(tm, 16), _round_up(N, 16)))
    while working_set(tm_eff) > budget and tm_eff > 64:
        tm_eff = max(64, _round_up(tm_eff // 2, 16))
    n_tiles = pl.cdiv(N, tm_eff)

    chunk = max(128, (min(head_chunk, C_pad) // 128) * 128)   # lane-dense chunk width

    kernel = functools.partial(imgfeat_head_kernel,
                               head_chunk=chunk, approx_gelu=approx_gelu)

    # --- advisory cost estimate (erf gelu is a VPU polynomial, not EUP) ---
    flops = 2 * N * H * (H + C_pad)
    bytes_accessed = (
        N * H * 4                                  # x (f32, cast in-kernel)
        + (H * H + H * C_pad) * wbytes             # resident matmul weights (read once)
        + (H + C_pad) * 4                          # biases
        + N * C_pad * out_bytes                    # fused lane-dense output
    )
    cost = pl.CostEstimate(
        flops=int(flops),
        transcendentals=int(N * H) if approx_gelu else 0,
        bytes_accessed=int(bytes_accessed),
    )
    vmem_limit = int(min(max(working_set(tm_eff), 32 << 20), budget))

    def build_grid_spec(buffered):
        def tok_spec(cols):
            return pl.BlockSpec((tm_eff, cols), lambda i: (i, 0))

        def resident_spec(shape):
            # constant index_map -> stays VMEM-resident across the whole grid;
            # single-buffer it (double-buffering a never-changing block only
            # doubles its VMEM footprint).
            if buffered:
                return pl.BlockSpec(shape, lambda i: (0, 0),
                                    pipeline_mode=pl.Buffered(1))
            return pl.BlockSpec(shape, lambda i: (0, 0))

        return pltpu.PrefetchScalarGridSpec(
            num_scalar_prefetch=0,
            grid=(n_tiles,),
            in_specs=[
                tok_spec(H),                                        # x
                resident_spec((H, H)), resident_spec((1, H)),       # w1, b1
                resident_spec((H, C_pad)), resident_spec((1, C_pad)),  # fused head W, b
            ],
            out_specs=tok_spec(C_pad),
        )

    def run(buffered):
        return pl.pallas_call(
            kernel,
            out_shape=jax.ShapeDtypeStruct((N, C_pad), out_dtype),
            grid_spec=build_grid_spec(buffered),
            compiler_params=pltpu.CompilerParams(
                dimension_semantics=("parallel",),
                vmem_limit_bytes=vmem_limit,
            ),
            cost_estimate=cost,
        )(x2, prep["w1"], prep["b1"], prep["wcat"], prep["bcat"])

    try:
        out = run(True)
    except Exception:
        # TODO(synk): pipeline_mode=pl.Buffered(1) not supported by this jax
        # version's pallas_call pipeliner; fall back to default double-buffering.
        out = run(False)

    feat = out[:, :F].reshape(B, S, F)
    obj = out[:, F:F + O].reshape(B, S, O)
    attr = out[:, F + O:F + O + A].reshape(B, S, A)
    return feat, obj, attr


def _reference(x, p, matmul_dtype=jnp.bfloat16):
    # pure-JAX reference mirroring the kernel's bf16-operand / f32-accumulate math
    def q(a):
        return a.astype(matmul_dtype).astype(jnp.float32)

    h = q(x) @ q(p["w1"]) + p["b1"]
    h = _gelu(h)
    mean = jnp.mean(h, axis=-1, keepdims=True)
    c = h - mean
    var = jnp.mean(c * c, axis=-1, keepdims=True)
    h = c * lax.rsqrt(var + 1e-12) * p["gamma"] + p["beta"]
    hq = q(h)
    return (
        hq @ q(p["wf"]) + p["bf"],
        hq @ q(p["wo"]) + p["bo"],
        hq @ q(p["wa"]) + p["ba"],
    )


if __name__ == "__main__":
    # Small synthetic config: HSIZE=32, IMGFEAT_SIZE=64, OBJ=48, ATTR=24
    B, S, H = 2, 8, 32
    F, O, A = 64, 48, 24

    key = jax.random.PRNGKey(0)
    ks = jax.random.split(key, 12)

    def init_w(k, shape, scale=0.02):
        return (scale * jax.random.normal(k, shape)).astype(jnp.float32)

    params = {
        "w1": init_w(ks[0], (H, H)),
        "b1": init_w(ks[1], (1, H)),
        "gamma": (1.0 + 0.1 * jax.random.normal(ks[9], (1, H))).astype(jnp.float32),
        "beta": (0.05 * jax.random.normal(ks[10], (1, H))).astype(jnp.float32),
        "wf": init_w(ks[2], (H, F)),
        "bf": init_w(ks[3], (1, F)),
        "wo": init_w(ks[4], (H, O)),
        "bo": init_w(ks[5], (1, O)),
        "wa": init_w(ks[6], (H, A)),
        "ba": init_w(ks[7], (1, A)),
    }

    x = jax.random.normal(ks[8], (B, S, H), jnp.float32)

    prep = prepare_imgfeat_head_params(params)
    feat, obj, attr = imgfeat_head(x, prep)
    jax.block_until_ready((feat, obj, attr))

    rf, ro, ra = _reference(x.reshape(B * S, H), params)
    assert jnp.allclose(feat.reshape(-1, F), rf, atol=5e-3, rtol=5e-3)
    assert jnp.allclose(obj.reshape(-1, O), ro, atol=5e-3, rtol=5e-3)
    assert jnp.allclose(attr.reshape(-1, A), ra, atol=5e-3, rtol=5e-3)

    print("KERNEL_OK")
</pallas_src>

<mosaic_0001>
module attributes {stable_mosaic.version = 11 : i64} {
  func.func @imgfeat_head_kernel(%arg0: i32, %arg1: memref<16x32xf32, #tpu.memory_space<vmem>>, %arg2: memref<32x32xbf16, #tpu.memory_space<vmem>>, %arg3: memref<1x32xf32, #tpu.memory_space<vmem>>, %arg4: memref<32x256xbf16, #tpu.memory_space<vmem>>, %arg5: memref<1x256xf32, #tpu.memory_space<vmem>>, %arg6: memref<16x256xf32, #tpu.memory_space<vmem>>) attributes {dimension_semantics = [#tpu.dimension_semantics<parallel>], iteration_bounds = array<i64: 1>, scalar_prefetch = 0 : i64, scratch_operands = 0 : i64, tpu.core_type = #tpu.core_type<tc>, window_params = [{transform_indices = @transform_0, window_bounds = array<i64: 16, 32>}, {pipeline_mode = #tpu.pipeline_mode<synchronous>, transform_indices = @transform_1, window_bounds = array<i64: 32, 32>}, {pipeline_mode = #tpu.pipeline_mode<synchronous>, transform_indices = @transform_2, window_bounds = array<i64: 1, 32>}, {pipeline_mode = #tpu.pipeline_mode<synchronous>, transform_indices = @transform_3, window_bounds = array<i64: 32, 256>}, {pipeline_mode = #tpu.pipeline_mode<synchronous>, transform_indices = @transform_4, window_bounds = array<i64: 1, 256>}, {transform_indices = @transform_5, window_bounds = array<i64: 16, 256>}]} {
    %c0 = arith.constant 0 : index
    %c0_0 = arith.constant 0 : index
    %0 = vector.load %arg1[%c0, %c0_0] : memref<16x32xf32, #tpu.memory_space<vmem>>, vector<16x32xf32>
    %1 = arith.truncf %0 : vector<16x32xf32> to vector<16x32xbf16>
    %c0_1 = arith.constant 0 : index
    %c0_2 = arith.constant 0 : index
    %2 = vector.load %arg2[%c0_1, %c0_2] : memref<32x32xbf16, #tpu.memory_space<vmem>>, vector<32x32xbf16>
    %cst = arith.constant dense<0.000000e+00> : vector<16x32xf32>
    %3 = tpu.matmul %1, %2, %cst {dimension_numbers = #tpu.dot_dimension_numbers<[1], [0], [0], [1], [0, 0, 1, 1], [], []>} : vector<16x32xbf16>, vector<32x32xbf16>, vector<16x32xf32> -> vector<16x32xf32>
    %c0_3 = arith.constant 0 : index
    %c0_4 = arith.constant 0 : index
    %4 = vector.load %arg3[%c0_3, %c0_4] : memref<1x32xf32, #tpu.memory_space<vmem>>, vector<1x32xf32>
    %5 = vector.broadcast %4 : vector<1x32xf32> to vector<16x32xf32>
    %6 = arith.addf %3, %5 : vector<16x32xf32>
    %cst_5 = arith.constant 5.000000e-01 : f32
    %7 = vector.broadcast %cst_5 : f32 to vector<16x32xf32>
    %8 = arith.mulf %7, %6 : vector<16x32xf32>
    %cst_6 = arith.constant 0.707106769 : f32
    %9 = vector.broadcast %cst_6 : f32 to vector<16x32xf32>
    %10 = arith.mulf %6, %9 : vector<16x32xf32>
    %11 = math.erf %10 : vector<16x32xf32>
    %cst_7 = arith.constant 1.000000e+00 : f32
    %12 = vector.broadcast %cst_7 : f32 to vector<16x32xf32>
    %13 = arith.addf %12, %11 : vector<16x32xf32>
    %14 = arith.mulf %8, %13 : vector<16x32xf32>
    %cst_8 = arith.constant dense<0.000000e+00> : vector<16xf32>
    %15 = vector.multi_reduction <add>, %14, %cst_8 [1] : vector<16x32xf32> to vector<16xf32>
    %16 = vector.shape_cast %15 : vector<16xf32> to vector<16x1xf32>
    %cst_9 = arith.constant 3.200000e+01 : f32
    %17 = vector.broadcast %cst_9 : f32 to vector<16x1xf32>
    %18 = arith.divf %16, %17 : vector<16x1xf32>
    %19 = vector.broadcast %18 : vector<16x1xf32> to vector<16x32xf32>
    %20 = arith.subf %14, %19 : vector<16x32xf32>
    %21 = arith.mulf %20, %20 : vector<16x32xf32>
    %cst_10 = arith.constant dense<0.000000e+00> : vector<16xf32>
    %22 = vector.multi_reduction <add>, %21, %cst_10 [1] : vector<16x32xf32> to vector<16xf32>
    %23 = vector.shape_cast %22 : vector<16xf32> to vector<16x1xf32>
    %cst_11 = arith.constant 3.200000e+01 : f32
    %24 = vector.broadcast %cst_11 : f32 to vector<16x1xf32>
    %25 = arith.divf %23, %24 : vector<16x1xf32>
    %cst_12 = arith.constant 9.99999996E-13 : f32
    %26 = vector.broadcast %cst_12 : f32 to vector<16x1xf32>
    %27 = arith.addf %25, %26 : vector<16x1xf32>
    %28 = math.rsqrt %27 : vector<16x1xf32>
    %29 = vector.broadcast %28 : vector<16x1xf32> to vector<16x32xf32>
    %30 = arith.mulf %20, %29 : vector<16x32xf32>
    %31 = arith.truncf %30 : vector<16x32xf32> to vector<16x32xbf16>
    %c0_13 = arith.constant 0 : index
    %c0_14 = arith.constant 0 : index
    %32 = vector.load %arg4[%c0_13, %c0_14] : memref<32x256xbf16, #tpu.memory_space<vmem>>, vector<32x256xbf16>
    %cst_15 = arith.constant dense<0.000000e+00> : vector<16x256xf32>
    %33 = tpu.matmul %31, %32, %cst_15 {dimension_numbers = #tpu.dot_dimension_numbers<[1], [0], [0], [1], [0, 0, 1, 1], [], []>} : vector<16x32xbf16>, vector<32x256xbf16>, vector<16x256xf32> -> vector<16x256xf32>
    %c0_16 = arith.constant 0 : index
    %c0_17 = arith.constant 0 : index
    %34 = vector.load %arg5[%c0_16, %c0_17] : memref<1x256xf32, #tpu.memory_space<vmem>>, vector<1x256xf32>
    %35 = vector.broadcast %34 : vector<1x256xf32> to vector<16x256xf32>
    %36 = arith.addf %33, %35 : vector<16x256xf32>
    %c0_18 = arith.constant 0 : index
    %c0_19 = arith.constant 0 : index
    %37 = vector.load %arg6[%c0_18, %c0_19] : memref<16x256xf32, #tpu.memory_space<vmem>>, vector<16x256xf32>
    tpu.vector_store %arg6[%c0_18, %c0_19], %36 {strides = array<i32>} : memref<16x256xf32, #tpu.memory_space<vmem>>, vector<16x256xf32>,
    return
  }
  func.func @transform_0(%arg0: i32) -> (i32, i32) {
    %c0_i32 = arith.constant 0 : i32
    %c0_i32_0 = arith.constant 0 : i32
    return %arg0, %c0_i32 : i32, i32
  }
  func.func @transform_1(%arg0: i32) -> (i32, i32) {
    %c0_i32 = arith.constant 0 : i32
    %c0_i32_0 = arith.constant 0 : i32
    %c0_i32_1 = arith.constant 0 : i32
    return %c0_i32, %c0_i32_0 : i32, i32
  }
  func.func @transform_2(%arg0: i32) -> (i32, i32) {
    %c0_i32 = arith.constant 0 : i32
    %c0_i32_0 = arith.constant 0 : i32
    %c0_i32_1 = arith.constant 0 : i32
    return %c0_i32, %c0_i32_0 : i32, i32
  }
  func.func @transform_3(%arg0: i32) -> (i32, i32) {
    %c0_i32 = arith.constant 0 : i32
    %c0_i32_0 = arith.constant 0 : i32
    %c0_i32_1 = arith.constant 0 : i32
    return %c0_i32, %c0_i32_0 : i32, i32
  }
  func.func @transform_4(%arg0: i32) -> (i32, i32) {
    %c0_i32 = arith.constant 0 : i32
    %c0_i32_0 = arith.constant 0 : i32
    %c0_i32_1 = arith.constant 0 : i32
    return %c0_i32, %c0_i32_0 : i32, i32
  }
  func.func @transform_5(%arg0: i32) -> (i32, i32) {
    %c0_i32 = arith.constant 0 : i32
    %c0_i32_0 = arith.constant 0 : i32
    return %arg0, %c0_i32 : i32, i32
  }
}

module attributes {stable_mosaic.version = 11 : i64} {
  func.func @imgfeat_head_kernel(%arg0: i32, %arg1: memref<16x32xf32, #tpu.memory_space<vmem>>, %arg2: memref<32x32xbf16, #tpu.memory_space<vmem>>, %arg3: memref<1x32xf32, #tpu.memory_space<vmem>>, %arg4: memref<32x256xbf16, #tpu.memory_space<vmem>>, %arg5: memref<1x256xf32, #tpu.memory_space<vmem>>, %arg6: memref<16x256xf32, #tpu.memory_space<vmem>>) attributes {dimension_semantics = [#tpu.dimension_semantics<parallel>], iteration_bounds = array<i64: 1>, scalar_prefetch = 0 : i64, scratch_operands = 0 : i64, tpu.core_type = #tpu.core_type<tc>, window_params = [{transform_indices = @transform_0, window_bounds = array<i64: 16, 32>}, {pipeline_mode = #tpu.pipeline_mode<synchronous>, transform_indices = @transform_1, window_bounds = array<i64: 32, 32>}, {pipeline_mode = #tpu.pipeline_mode<synchronous>, transform_indices = @transform_2, window_bounds = array<i64: 1, 32>}, {pipeline_mode = #tpu.pipeline_mode<synchronous>, transform_indices = @transform_3, window_bounds = array<i64: 32, 256>}, {pipeline_mode = #tpu.pipeline_mode<synchronous>, transform_indices = @transform_4, window_bounds = array<i64: 1, 256>}, {transform_indices = @transform_5, window_bounds = array<i64: 16, 256>}]} {
    %c0 = arith.constant 0 : index
    %c0_0 = arith.constant 0 : index
    %0 = vector.load %arg1[%c0, %c0_0] : memref<16x32xf32, #tpu.memory_space<vmem>>, vector<16x32xf32>
    %1 = arith.truncf %0 : vector<16x32xf32> to vector<16x32xbf16>
    %c0_1 = arith.constant 0 : index
    %c0_2 = arith.constant 0 : index
    %2 = vector.load %arg2[%c0_1, %c0_2] : memref<32x32xbf16, #tpu.memory_space<vmem>>, vector<32x32xbf16>
    %cst = arith.constant dense<0.000000e+00> : vector<16x32xf32>
    %3 = tpu.matmul %1, %2, %cst {dimension_numbers = #tpu.dot_dimension_numbers<[1], [0], [0], [1], [0, 0, 1, 1], [], []>} : vector<16x32xbf16>, vector<32x32xbf16>, vector<16x32xf32> -> vector<16x32xf32>
    %c0_3 = arith.constant 0 : index
    %c0_4 = arith.constant 0 : index
    %4 = vector.load %arg3[%c0_3, %c0_4] : memref<1x32xf32, #tpu.memory_space<vmem>>, vector<1x32xf32>
    %5 = vector.broadcast %4 : vector<1x32xf32> to vector<16x32xf32>
    %6 = arith.addf %3, %5 : vector<16x32xf32>
    %cst_5 = arith.constant 5.000000e-01 : f32
    %7 = vector.broadcast %cst_5 : f32 to vector<16x32xf32>
    %8 = arith.mulf %7, %6 : vector<16x32xf32>
    %cst_6 = arith.constant 0.707106769 : f32
    %9 = vector.broadcast %cst_6 : f32 to vector<16x32xf32>
    %10 = arith.mulf %6, %9 : vector<16x32xf32>
    %11 = math.erf %10 : vector<16x32xf32>
    %cst_7 = arith.constant 1.000000e+00 : f32
    %12 = vector.broadcast %cst_7 : f32 to vector<16x32xf32>
    %13 = arith.addf %12, %11 : vector<16x32xf32>
    %14 = arith.mulf %8, %13 : vector<16x32xf32>
    %cst_8 = arith.constant dense<0.000000e+00> : vector<16xf32>
    %15 = vector.multi_reduction <add>, %14, %cst_8 [1] : vector<16x32xf32> to vector<16xf32>
    %16 = vector.shape_cast %15 : vector<16xf32> to vector<16x1xf32>
    %cst_9 = arith.constant 3.200000e+01 : f32
    %17 = vector.broadcast %cst_9 : f32 to vector<16x1xf32>
    %18 = arith.divf %16, %17 : vector<16x1xf32>
    %19 = vector.broadcast %18 : vector<16x1xf32> to vector<16x32xf32>
    %20 = arith.subf %14, %19 : vector<16x32xf32>
    %21 = arith.mulf %20, %20 : vector<16x32xf32>
    %cst_10 = arith.constant dense<0.000000e+00> : vector<16xf32>
    %22 = vector.multi_reduction <add>, %21, %cst_10 [1] : vector<16x32xf32> to vector<16xf32>
    %23 = vector.shape_cast %22 : vector<16xf32> to vector<16x1xf32>
    %cst_11 = arith.constant 3.200000e+01 : f32
    %24 = vector.broadcast %cst_11 : f32 to vector<16x1xf32>
    %25 = arith.divf %23, %24 : vector<16x1xf32>
    %cst_12 = arith.constant 9.99999996E-13 : f32
    %26 = vector.broadcast %cst_12 : f32 to vector<16x1xf32>
    %27 = arith.addf %25, %26 : vector<16x1xf32>
    %28 = math.rsqrt %27 : vector<16x1xf32>
    %29 = vector.broadcast %28 : vector<16x1xf32> to vector<16x32xf32>
    %30 = arith.mulf %20, %29 : vector<16x32xf32>
    %31 = arith.truncf %30 : vector<16x32xf32> to vector<16x32xbf16>
    %c0_13 = arith.constant 0 : index
    %c0_14 = arith.constant 0 : index
    %32 = vector.load %arg4[%c0_13, %c0_14] : memref<32x256xbf16, #tpu.memory_space<vmem>>, vector<32x256xbf16>
    %cst_15 = arith.constant dense<0.000000e+00> : vector<16x256xf32>
    %33 = tpu.matmul %31, %32, %cst_15 {dimension_numbers = #tpu.dot_dimension_numbers<[1], [0], [0], [1], [0, 0, 1, 1], [], []>} : vector<16x32xbf16>, vector<32x256xbf16>, vector<16x256xf32> -> vector<16x256xf32>
    %c0_16 = arith.constant 0 : index
    %c0_17 = arith.constant 0 : index
    %34 = vector.load %arg5[%c0_16, %c0_17] : memref<1x256xf32, #tpu.memory_space<vmem>>, vector<1x256xf32>
    %35 = vector.broadcast %34 : vector<1x256xf32> to vector<16x256xf32>
    %36 = arith.addf %33, %35 : vector<16x256xf32>
    %c0_18 = arith.constant 0 : index
    %c0_19 = arith.constant 0 : index
    %37 = vector.load %arg6[%c0_18, %c0_19] : memref<16x256xf32, #tpu.memory_space<vmem>>, vector<16x256xf32>
    tpu.vector_store %arg6[%c0_18, %c0_19], %36 {strides = array<i32>} : memref<16x256xf32, #tpu.memory_space<vmem>>, vector<16x256xf32>,
    return
  }
  func.func @transform_0(%arg0: i32) -> (i32, i32) {
    %c0_i32 = arith.constant 0 : i32
    %c0_i32_0 = arith.constant 0 : i32
    return %arg0, %c0_i32 : i32, i32
  }
  func.func @transform_1(%arg0: i32) -> (i32, i32) {
    %c0_i32 = arith.constant 0 : i32
    %c0_i32_0 = arith.constant 0 : i32
    %c0_i32_1 = arith.constant 0 : i32
    return %c0_i32, %c0_i32_0 : i32, i32
  }
  func.func @transform_2(%arg0: i32) -> (i32, i32) {
    %c0_i32 = arith.constant 0 : i32
    %c0_i32_0 = arith.constant 0 : i32
    %c0_i32_1 = arith.constant 0 : i32
    return %c0_i32, %c0_i32_0 : i32, i32
  }
  func.func @transform_3(%arg0: i32) -> (i32, i32) {
    %c0_i32 = arith.constant 0 : i32
    %c0_i32_0 = arith.constant 0 : i32
    %c0_i32_1 = arith.constant 0 : i32
    return %c0_i32, %c0_i32_0 : i32, i32
  }
  func.func @transform_4(%arg0: i32) -> (i32, i32) {
    %c0_i32 = arith.constant 0 : i32
    %c0_i32_0 = arith.constant 0 : i32
    %c0_i32_1 = arith.constant 0 : i32
    return %c0_i32, %c0_i32_0 : i32, i32
  }
  func.func @transform_5(%arg0: i32) -> (i32, i32) {
    %c0_i32 = arith.constant 0 : i32
    %c0_i32_0 = arith.constant 0 : i32
    return %arg0, %c0_i32 : i32, i32
  }
}

</mosaic_0001>

<bundles_post_ra>
// kernel: tpu_custom_call.1
= control target key start
LH: loop header
LB: loop body
LE: loop exit
PB: predicated region body
PF: predicated region fallthrough
CT: control target
= control target key end

     0   :  { %10 = vsyncpa [#allocation3], 0  ;;  %s522_s0 = inlined_call_operand.hbm [shape: f32[16,32], index: 0, kind: input, shape index: {}]   ;;  %s523_s1 = inlined_call_operand.hbm [shape: bf16[32,32], index: 1, kind: input, shape index: {}]   ;;  %s524_s2 = inlined_call_operand.vmem [shape: f32[1,32], index: 2, kind: input, shape index: {}]   ;;  %s525_s3 = inlined_call_operand.hbm [shape: bf16[32,256], index: 3, kind: input, shape index: {}]   ;;  %s526_s4 = inlined_call_operand.vmem [shape: f32[1,256], index: 4, kind: input, shape index: {}]   ;;  %s527_s5 = inlined_call_operand.hbm [shape: f32[16,256], index: 5, kind: output, shape index: {}]  }
   0x1   :  { %11 = vsyncpa [#allocation6], 0 }
   0x2   :  { %12 = vsyncpa [#allocation4], 0  ;;  %s419_s18 = smov [#allocation5]   ;;  %s325_s22 = scalar_lea.hbm %s523_s1, 256 }
   0x3   :  { %s30_s19 = sshll.u32 %s419_s18, 4  ;;  %p326_p0 = scmp.ne.s32.totalorder %s523_s1, %s325_s22  ;;  %s31_s19 = int_to_ptr.vmem [resolvable:$true] %s30_s19 }
   0x4   :  { %p329_p1 = scmp.lt.u32.totalorder %s325_s22, %s523_s1 }
   0x6   :  { %p331_p2 = pnand %p329_p1, %p326_p0 }
   0x8   :  { %334 = shalt.err (!%p331_p2)
}
   0x9   :  { %s335_s27 = scalar_lea.vmem %s31_s19, 256  ;;  %p340_p4 = scmp.lt.s32.totalorder %s31_s19, %s31_s19 }
   0xa   :  { %p336_p3 = scmp.ne.s32.totalorder %s31_s19, %s335_s27  ;;  %p341_p5 = scmp.lt.s32.totalorder %s335_s27, %s335_s27 }
   0xc   :  { %p342_p6 = por %p341_p5, %p340_p4 }
   0xe   :  { %p343_p7 = pnand %p342_p6, %p336_p3 }
  0x10   :  { %346 = shalt.err (!%p343_p7)
}
  0x11   :  { %s420_s28 = smov 64   ;;  %s421_s29 = smov 4  }
  0x12   :  { %36 = dma.hbm_to_vmem [thread:$0]  %s523_s1, 256, %s31_s19, [#allocation6], %s420_s28, %s420_s28, %s421_s29  }
  0x13   :  { %s422_s7 = smov [#allocation2]   ;;  %s347_s11 = scalar_lea.hbm %s522_s0, 256 }
  0x14   :  { %s18_s8 = sshll.u32 %s422_s7, 4  ;;  %p348_p8 = scmp.ne.s32.totalorder %s522_s0, %s347_s11  ;;  %s19_s8 = int_to_ptr.vmem [resolvable:$true] %s18_s8 }
  0x15   :  { %p351_p9 = scmp.lt.u32.totalorder %s347_s11, %s522_s0 }
  0x17   :  { %p353_p10 = pnand %p351_p9, %p348_p8 }
  0x19   :  { %356 = shalt.err (!%p353_p10)
}
  0x1a   :  { %s357_s16 = scalar_lea.vmem %s19_s8, 256  ;;  %p362_p12 = scmp.lt.s32.totalorder %s19_s8, %s19_s8 }
  0x1b   :  { %p358_p11 = scmp.ne.s32.totalorder %s19_s8, %s357_s16  ;;  %p363_p13 = scmp.lt.s32.totalorder %s357_s16, %s357_s16 }
  0x1d   :  { %p364_p0 = por %p363_p13, %p362_p12 }
  0x1f   :  { %p365_p1 = pnand %p364_p0, %p358_p11 }
  0x21   :  { %368 = shalt.err (!%p365_p1)
}
  0x22   :  { %s423_s1 = smov 128   ;;  %s424_s17 = smov 8  }
  0x23   :  { %24 = dma.hbm_to_vmem [thread:$0]  %s522_s0, 256, %s19_s8, [#allocation3], %s423_s1, %s423_s1, %s424_s17  }
  0x24   :  { %s425_s20 = smov [#allocation7]   ;;  %s369_s24 = scalar_lea.hbm %s525_s3, 512 }
  0x25   :  { %s44_s21 = sshll.u32 %s425_s20, 4  ;;  %p370_p2 = scmp.ne.s32.totalorder %s525_s3, %s369_s24  ;;  %s45_s21 = int_to_ptr.vmem [resolvable:$true] %s44_s21 }
  0x26   :  { %p373_p3 = scmp.lt.u32.totalorder %s369_s24, %s525_s3 }
  0x28   :  { %p375_p4 = pnand %p373_p3, %p370_p2 }
  0x2a   :  { %378 = shalt.err (!%p375_p4)
}
  0x2b   :  { %s379_s29 = scalar_lea.vmem %s45_s21, 512  ;;  %p384_p6 = scmp.lt.s32.totalorder %s45_s21, %s45_s21 }
  0x2c   :  { %p380_p5 = scmp.ne.s32.totalorder %s45_s21, %s379_s29  ;;  %p385_p7 = scmp.lt.s32.totalorder %s379_s29, %s379_s29 }
  0x2e   :  { %p386_p8 = por %p385_p7, %p384_p6 }
  0x30   :  { %p387_p9 = pnand %p386_p8, %p380_p5 }
  0x32   :  { %390 = shalt.err (!%p387_p9)
}
  0x33   :  { %50 = dma.hbm_to_vmem [thread:$0]  %s525_s3, 512, %s45_s21, [#allocation6], %s423_s1, %s423_s1, %s424_s17  }
  0x34   :  { %413 = dma.done.wait [#allocation3], 256  }
  0x35   :  { %414 = vsyncadd [#allocation3], 4294967040 }
  0x36   :  { %415 = dma.done.wait [#allocation6], 768  }
  0x37   :  { %416 = vsyncadd [#allocation6], 4294966528  ;;  %v426_v0 = vmov 0.0   ;;  %vm427_vm0 = vmmov 0   ;;  %v309_v1 = vld [vmem:[#allocation5] sm:$0xff]   ;;  %v310_v2 = vld [vmem:[#allocation5 + $0x8] sm:$0xff]   ;;  %v178_v51 = vlaneseq }
  0x38   :  { %288 = vmatprep.subr.bf16.mxu0 %v426_v0  ;;  %292 = vmatprep.mubr.msk.bf16.mxu0 %vm427_vm0, %v426_v0  ;;  %v63_v3 = vld [vmem:[#allocation2] sm:$0xff]  ;;  %v64_v4 = vld [vmem:[#allocation2 + $0x8] sm:$0xff]  ;;  %vm89_vm1 = vcmask 261120   ;;  %v314_v37 = vld [vmem:[#allocation7 + $0x14] ss:$8 sps:$4 sm:$0xff]   ;;  %v428_v38 = vmov 0  }
  0x39   :  { %289 = vmatpush3.bf16.msra.mxu0 %v309_v1  ;;  %v65_v5 = vpack.c.bf16 %v64_v4, %v63_v3  ;;  %v276_v6 = vld [vmem:[%s524_s2] ss:$0 sm:$0xff]  ;;  %v311_v35 = vld [vmem:[#allocation7 + $0x4] ss:$8 sps:$4 sm:$0xff]   ;;  %243 = vmatprep.mubr.bf16.mxu1 %v428_v38  ;;  %v316_v39 = vld [vmem:[#allocation7 + $0x10] ss:$8 sps:$4 sm:$0xff]  }
  0x3a   :  { %290 = vmatprep.subr.bf16.mxu0 %v426_v0  ;;  %v313_v36 = vld [vmem:[#allocation7] ss:$8 sps:$4 sm:$0xff]   ;;  %211 = vmatprep.subr.bf16.mxu1 %v311_v35  ;;  %v179_v52 = vshrl.u32 %v178_v51, 7  ;;  %s429_s8 = smov [#allocation8]  }
  0x3b   :  { %212 = vmatpush1.bf16.msra.mxu1 %v313_v36  ;;  %v176_v54 = vld [vmem:[%s526_s4] sm:$0x3]  ;;  %s263_s9 = sshll.u32 %s429_s8, 4  ;;  %s264_s9 = int_to_ptr.vmem [resolvable:$true] %s263_s9 }
  0x3c   :  { %213 = vmatprep.subr.bf16.mxu1 %v314_v37  ;;  %v180_v53 = vsub.s32 0, %v179_v52  ;;  %v184_v55 = vsub.s32 1, %v179_v52  ;;  %s391_s10 = scalar_lea.vmem %s264_s9, 512  ;;  %p396_p11 = scmp.lt.s32.totalorder %s264_s9, %s264_s9 }
  0x3d   :  { %291 = vmatpush3.bf16.msra.mxu0 %v310_v2  ;;  %p392_p10 = scmp.ne.s32.totalorder %s264_s9, %s391_s10  ;;  %p397_p12 = scmp.lt.s32.totalorder %s391_s10, %s391_s10 }
  0x3e   :  { %v181_v56 = vrot.slane %v176_v54, %v180_v53  ;;  %v185_v57 = vrot.slane %v176_v54, %v184_v55 }
  0x3f   :  { %214 = vmatpush1.bf16.msra.mxu1 %v316_v39  ;;  %p398_p13 = por %p397_p12, %p396_p11 }
  0x40   :  { %293 = vmatmul.mubr.msk.bf16.vlgmr.msra.gmra.mrb[0].mxu0 %vm89_vm1, %v65_v5 }
  0x41   :  { %p399_p0 = pnand %p398_p13, %p392_p10 }
 0x113   :  { %v127_v7 = vpop.f32.mrb[0].mxu0 }
 0x114   :  { %v128_v8 = vadd.f32 %v276_v6, %v127_v7  ;;  %v294_v9 = vpop.f32.mrb[1].mxu0 }
 0x115   :  { %v130_v10 = vpop.f32.mrb[2].mxu0 }
 0x116   :  { %v136_v11 = vmul.f32 0.70710677, %v128_v8  ;;  %v131_v12 = vadd.f32 %v276_v6, %v130_v10  ;;  %v295_v13 = vpop.f32.mrb[3].mxu0  ;;  %v134_v16 = vmul.f32 0.5, %v128_v8 }
 0x118   :  { %317 = verf.f32 %v136_v11  ;;  %v137_v14 = vmul.f32 0.70710677, %v131_v12  ;;  %v135_v19 = vmul.f32 0.5, %v131_v12 }
 0x11a   :  { %319 = verf.f32 %v137_v14 }
 0x122   :  { %v318_v15 = vpop.eup %317 }
 0x123   :  { %v140_v17 = vadd.f32 1.0, %v318_v15 }
 0x124   :  { %v320_v18 = vpop.eup %319 }
 0x125   :  { %v142_v20 = vmul.f32 %v140_v17, %v134_v16  ;;  %v141_v21 = vadd.f32 1.0, %v320_v18 }
 0x127   :  { %v144_v22 = vsel %vm89_vm1, %v142_v20, 0.0  ;;  %v143_v23 = vmul.f32 %v141_v21, %v135_v19 }
 0x128   :  { %145 = vadd.xlane.f32.xlu0 %v144_v22 }
 0x129   :  { %v147_v24 = vsel %vm89_vm1, %v143_v23, 0.0 }
 0x12c   :  { %148 = vadd.xlane.f32.xlu0 %v147_v24 }
 0x1b5   :  { %v146_v25 = vpop.xlane.xlu0 %145 }
 0x1b6   :  { %v151_v26 = vmul.f32 0.03125, %v146_v25 }
 0x1b8   :  { %v153_v27 = vsub.f32 %v142_v20, %v151_v26 }
 0x1b9   :  { %v149_v28 = vpop.xlane.xlu0 %148 }
 0x1ba   :  { %v152_v29 = vmul.f32 0.03125, %v149_v28  ;;  %v155_v30 = vmul.f32 %v153_v27, %v153_v27 }
 0x1bc   :  { %v154_v31 = vsub.f32 %v143_v23, %v152_v29  ;;  %v157_v32 = vsel %vm89_vm1, %v155_v30, 0.0 }
 0x1bd   :  { %158 = vadd.xlane.f32.xlu1 %v157_v32 }
 0x1be   :  { %v156_v33 = vmul.f32 %v154_v31, %v154_v31 }
 0x1c0   :  { %v160_v34 = vsel %vm89_vm1, %v156_v33, 0.0 }
 0x1c1   :  { %161 = vadd.xlane.f32.xlu1 %v160_v34 }
 0x24a   :  { %v159_v40 = vpop.xlane.xlu1 %158 }
 0x24b   :  { %v163_v41 = vmul.f32 0.03125, %v159_v40 }
 0x24d   :  { %v165_v42 = vadd.f32 1e-12, %v163_v41 }
 0x24e   :  { %v162_v43 = vpop.xlane.xlu1 %161 }
 0x24f   :  { %v164_v44 = vmul.f32 0.03125, %v162_v43  ;;  %321 = vrsqrt.f32 %v165_v42 }
 0x251   :  { %v166_v45 = vadd.f32 1e-12, %v164_v44 }
 0x253   :  { %323 = vrsqrt.f32 %v166_v45 }
 0x259   :  { %v322_v46 = vpop.eup %321 }
 0x25a   :  { %v169_v48 = vmul.f32 %v322_v46, %v153_v27 }
 0x25d   :  { %v324_v47 = vpop.eup %323 }
 0x25e   :  { %v170_v49 = vmul.f32 %v324_v47, %v154_v31 }
 0x260   :  { %v171_v50 = vpack.c.bf16 %v170_v49, %v169_v48 }
 0x262   :  { %284 = vmatmul.mubr.msk.bf16.vlgmr.msra.gmra.mrb[0].mxu1 %vm89_vm1, %v171_v50 }
 0x335   :  { %v245_v58 = vpop.f32.mrb[0].mxu1 }
 0x336   :  { %v246_v59 = vadd.f32 %v245_v58, %v181_v56  ;;  %v247_v60 = vpop.f32.mrb[1].mxu1 }
 0x337   :  { %v248_v61 = vadd.f32 %v247_v60, %v185_v57  ;;  %v249_v62 = vpop.f32.mrb[2].mxu1 }
 0x338   :  { %254 = vst [vmem:[#allocation8] sm:$0xff] %v246_v59  ;;  %v250_v63 = vadd.f32 %v249_v62, %v181_v56  ;;  %v251_v0 = vpop.f32.mrb[3].mxu1 }
 0x339   :  { %255 = vst [vmem:[#allocation8 + $0x8] sm:$0xff] %v248_v61  ;;  %v252_v1 = vadd.f32 %v251_v0, %v185_v57 }
 0x33a   :  { %256 = vst [vmem:[#allocation8 + $0x10] sm:$0xff] %v250_v63 }
 0x33b   :  { %257 = vst [vmem:[#allocation8 + $0x18] sm:$0xff] %v252_v1 }
 0x33c   :  { %402 = shalt.err (!%p399_p0)
}
 0x33d   :  { %s403_s12 = scalar_lea.hbm %s527_s5, 512 }
 0x33e   :  { %p404_p1 = scmp.ne.s32.totalorder %s527_s5, %s403_s12  ;;  %p407_p2 = scmp.lt.u32.totalorder %s403_s12, %s527_s5 }
 0x340   :  { %p409_p3 = pnand %p407_p2, %p404_p1 }
 0x342   :  { %412 = shalt.err (!%p409_p3)
}
 0x343   :  { %s430_s1 = smov 256   ;;  %s431_s17 = smov 16  }
 0x344   :  { %269 = dma.vmem_to_hbm [thread:$0]  %s264_s9, 512, %s527_s5, [#allocation4], %s430_s1, %s430_s1, %s431_s17  }
 0x345   :  { %417 = dma.done.wait [#allocation4], 512  }
 0x346   :  { %418 = vsyncadd [#allocation4], 4294966784 }
 0x347   :  { %273 = vsyncpa [#allocation3], 1 }
 0x348   :  { %274 = vsyncpa [#allocation6], 1 }
 0x349   :  { %275 = vsyncpa [#allocation4], 1 }

// kernel: tpu_custom_call.1
= control target key start
LH: loop header
LB: loop body
LE: loop exit
PB: predicated region body
PF: predicated region fallthrough
CT: control target
= control target key end

     0   :  { %10 = vsyncpa [#allocation3], 0  ;;  %s522_s0 = inlined_call_operand.hbm [shape: f32[16,32], index: 0, kind: input, shape index: {}]   ;;  %s523_s1 = inlined_call_operand.hbm [shape: bf16[32,32], index: 1, kind: input, shape index: {}]   ;;  %s524_s2 = inlined_call_operand.vmem [shape: f32[1,32], index: 2, kind: input, shape index: {}]   ;;  %s525_s3 = inlined_call_operand.hbm [shape: bf16[32,256], index: 3, kind: input, shape index: {}]   ;;  %s526_s4 = inlined_call_operand.vmem [shape: f32[1,256], index: 4, kind: input, shape index: {}]   ;;  %s527_s5 = inlined_call_operand.hbm [shape: f32[16,256], index: 5, kind: output, shape index: {}]  }
   0x1   :  { %11 = vsyncpa [#allocation6], 0 }
   0x2   :  { %12 = vsyncpa [#allocation4], 0  ;;  %s419_s18 = smov [#allocation5]   ;;  %s325_s22 = scalar_lea.hbm %s523_s1, 256 }
   0x3   :  { %s30_s19 = sshll.u32 %s419_s18, 4  ;;  %p326_p0 = scmp.ne.s32.totalorder %s523_s1, %s325_s22  ;;  %s31_s19 = int_to_ptr.vmem [resolvable:$true] %s30_s19 }
   0x4   :  { %p329_p1 = scmp.lt.u32.totalorder %s325_s22, %s523_s1 }
   0x6   :  { %p331_p2 = pnand %p329_p1, %p326_p0 }
   0x8   :  { %334 = shalt.err (!%p331_p2)
}
   0x9   :  { %s335_s27 = scalar_lea.vmem %s31_s19, 256  ;;  %p340_p4 = scmp.lt.s32.totalorder %s31_s19, %s31_s19 }
   0xa   :  { %p336_p3 = scmp.ne.s32.totalorder %s31_s19, %s335_s27  ;;  %p341_p5 = scmp.lt.s32.totalorder %s335_s27, %s335_s27 }
   0xc   :  { %p342_p6 = por %p341_p5, %p340_p4 }
   0xe   :  { %p343_p7 = pnand %p342_p6, %p336_p3 }
  0x10   :  { %346 = shalt.err (!%p343_p7)
}
  0x11   :  { %s420_s28 = smov 64   ;;  %s421_s29 = smov 4  }
  0x12   :  { %36 = dma.hbm_to_vmem [thread:$0]  %s523_s1, 256, %s31_s19, [#allocation6], %s420_s28, %s420_s28, %s421_s29  }
  0x13   :  { %s422_s7 = smov [#allocation2]   ;;  %s347_s11 = scalar_lea.hbm %s522_s0, 256 }
  0x14   :  { %s18_s8 = sshll.u32 %s422_s7, 4  ;;  %p348_p8 = scmp.ne.s32.totalorder %s522_s0, %s347_s11  ;;  %s19_s8 = int_to_ptr.vmem [resolvable:$true] %s18_s8 }
  0x15   :  { %p351_p9 = scmp.lt.u32.totalorder %s347_s11, %s522_s0 }
  0x17   :  { %p353_p10 = pnand %p351_p9, %p348_p8 }
  0x19   :  { %356 = shalt.err (!%p353_p10)
}
  0x1a   :  { %s357_s16 = scalar_lea.vmem %s19_s8, 256  ;;  %p362_p12 = scmp.lt.s32.totalorder %s19_s8, %s19_s8 }
  0x1b   :  { %p358_p11 = scmp.ne.s32.totalorder %s19_s8, %s357_s16  ;;  %p363_p13 = scmp.lt.s32.totalorder %s357_s16, %s357_s16 }
  0x1d   :  { %p364_p0 = por %p363_p13, %p362_p12 }
  0x1f   :  { %p365_p1 = pnand %p364_p0, %p358_p11 }
  0x21   :  { %368 = shalt.err (!%p365_p1)
}
  0x22   :  { %s423_s1 = smov 128   ;;  %s424_s17 = smov 8  }
  0x23   :  { %24 = dma.hbm_to_vmem [thread:$0]  %s522_s0, 256, %s19_s8, [#allocation3], %s423_s1, %s423_s1, %s424_s17  }
  0x24   :  { %s425_s20 = smov [#allocation7]   ;;  %s369_s24 = scalar_lea.hbm %s525_s3, 512 }
  0x25   :  { %s44_s21 = sshll.u32 %s425_s20, 4  ;;  %p370_p2 = scmp.ne.s32.totalorder %s525_s3, %s369_s24  ;;  %s45_s21 = int_to_ptr.vmem [resolvable:$true] %s44_s21 }
  0x26   :  { %p373_p3 = scmp.lt.u32.totalorder %s369_s24, %s525_s3 }
  0x28   :  { %p375_p4 = pnand %p373_p3, %p370_p2 }
  0x2a   :  { %378 = shalt.err (!%p375_p4)
}
  0x2b   :  { %s379_s29 = scalar_lea.vmem %s45_s21, 512  ;;  %p384_p6 = scmp.lt.s32.totalorder %s45_s21, %s45_s21 }
  0x2c   :  { %p380_p5 = scmp.ne.s32.totalorder %s45_s21, %s379_s29  ;;  %p385_p7 = scmp.lt.s32.totalorder %s379_s29, %s379_s29 }
  0x2e   :  { %p386_p8 = por %p385_p7, %p384_p6 }
  0x30   :  { %p387_p9 = pnand %p386_p8, %p380_p5 }
  0x32   :  { %390 = shalt.err (!%p387_p9)
}
  0x33   :  { %50 = dma.hbm_to_vmem [thread:$0]  %s525_s3, 512, %s45_s21, [#allocation6], %s423_s1, %s423_s1, %s424_s17  }
  0x34   :  { %413 = dma.done.wait [#allocation3], 256  }
  0x35   :  { %414 = vsyncadd [#allocation3], 4294967040 }
  0x36   :  { %415 = dma.done.wait [#allocation6], 768  }
  0x37   :  { %416 = vsyncadd [#allocation6], 4294966528  ;;  %v426_v0 = vmov 0.0   ;;  %vm427_vm0 = vmmov 0   ;;  %v309_v1 = vld [vmem:[#allocation5] sm:$0xff]   ;;  %v310_v2 = vld [vmem:[#allocation5 + $0x8] sm:$0xff]   ;;  %v178_v51 = vlaneseq }
  0x38   :  { %288 = vmatprep.subr.bf16.mxu0 %v426_v0  ;;  %292 = vmatprep.mubr.msk.bf16.mxu0 %vm427_vm0, %v426_v0  ;;  %v63_v3 = vld [vmem:[#allocation2] sm:$0xff]  ;;  %v64_v4 = vld [vmem:[#allocation2 + $0x8] sm:$0xff]  ;;  %vm89_vm1 = vcmask 261120   ;;  %v314_v37 = vld [vmem:[#allocation7 + $0x14] ss:$8 sps:$4 sm:$0xff]   ;;  %v428_v38 = vmov 0  }
  0x39   :  { %289 = vmatpush3.bf16.msra.mxu0 %v309_v1  ;;  %v65_v5 = vpack.c.bf16 %v64_v4, %v63_v3  ;;  %v276_v6 = vld [vmem:[%s524_s2] ss:$0 sm:$0xff]  ;;  %v311_v35 = vld [vmem:[#allocation7 + $0x4] ss:$8 sps:$4 sm:$0xff]   ;;  %243 = vmatprep.mubr.bf16.mxu1 %v428_v38  ;;  %v316_v39 = vld [vmem:[#allocation7 + $0x10] ss:$8 sps:$4 sm:$0xff]  }
  0x3a   :  { %290 = vmatprep.subr.bf16.mxu0 %v426_v0  ;;  %v313_v36 = vld [vmem:[#allocation7] ss:$8 sps:$4 sm:$0xff]   ;;  %211 = vmatprep.subr.bf16.mxu1 %v311_v35  ;;  %v179_v52 = vshrl.u32 %v178_v51, 7  ;;  %s429_s8 = smov [#allocation8]  }
  0x3b   :  { %212 = vmatpush1.bf16.msra.mxu1 %v313_v36  ;;  %v176_v54 = vld [vmem:[%s526_s4] sm:$0x3]  ;;  %s263_s9 = sshll.u32 %s429_s8, 4  ;;  %s264_s9 = int_to_ptr.vmem [resolvable:$true] %s263_s9 }
  0x3c   :  { %213 = vmatprep.subr.bf16.mxu1 %v314_v37  ;;  %v180_v53 = vsub.s32 0, %v179_v52  ;;  %v184_v55 = vsub.s32 1, %v179_v52  ;;  %s391_s10 = scalar_lea.vmem %s264_s9, 512  ;;  %p396_p11 = scmp.lt.s32.totalorder %s264_s9, %s264_s9 }
  0x3d   :  { %291 = vmatpush3.bf16.msra.mxu0 %v310_v2  ;;  %p392_p10 = scmp.ne.s32.totalorder %s264_s9, %s391_s10  ;;  %p397_p12 = scmp.lt.s32.totalorder %s391_s10, %s391_s10 }
  0x3e   :  { %v181_v56 = vrot.slane %v176_v54, %v180_v53  ;;  %v185_v57 = vrot.slane %v176_v54, %v184_v55 }
  0x3f   :  { %214 = vmatpush1.bf16.msra.mxu1 %v316_v39  ;;  %p398_p13 = por %p397_p12, %p396_p11 }
  0x40   :  { %293 = vmatmul.mubr.msk.bf16.vlgmr.msra.gmra.mrb[0].mxu0 %vm89_vm1, %v65_v5 }
  0x41   :  { %p399_p0 = pnand %p398_p13, %p392_p10 }
 0x113   :  { %v127_v7 = vpop.f32.mrb[0].mxu0 }
 0x114   :  { %v128_v8 = vadd.f32 %v276_v6, %v127_v7  ;;  %v294_v9 = vpop.f32.mrb[1].mxu0 }
 0x115   :  { %v130_v10 = vpop.f32.mrb[2].mxu0 }
 0x116   :  { %v136_v11 = vmul.f32 0.70710677, %v128_v8  ;;  %v131_v12 = vadd.f32 %v276_v6, %v130_v10  ;;  %v295_v13 = vpop.f32.mrb[3].mxu0  ;;  %v134_v16 = vmul.f32 0.5, %v128_v8 }
 0x118   :  { %317 = verf.f32 %v136_v11  ;;  %v137_v14 = vmul.f32 0.70710677, %v131_v12  ;;  %v135_v19 = vmul.f32 0.5, %v131_v12 }
 0x11a   :  { %319 = verf.f32 %v137_v14 }
 0x122   :  { %v318_v15 = vpop.eup %317 }
 0x123   :  { %v140_v17 = vadd.f32 1.0, %v318_v15 }
 0x124   :  { %v320_v18 = vpop.eup %319 }
 0x125   :  { %v142_v20 = vmul.f32 %v140_v17, %v134_v16  ;;  %v141_v21 = vadd.f32 1.0, %v320_v18 }
 0x127   :  { %v144_v22 = vsel %vm89_vm1, %v142_v20, 0.0  ;;  %v143_v23 = vmul.f32 %v141_v21, %v135_v19 }
 0x128   :  { %145 = vadd.xlane.f32.xlu0 %v144_v22 }
 0x129   :  { %v147_v24 = vsel %vm89_vm1, %v143_v23, 0.0 }
 0x12c   :  { %148 = vadd.xlane.f32.xlu0 %v147_v24 }
 0x1b5   :  { %v146_v25 = vpop.xlane.xlu0 %145 }
 0x1b6   :  { %v151_v26 = vmul.f32 0.03125, %v146_v25 }
 0x1b8   :  { %v153_v27 = vsub.f32 %v142_v20, %v151_v26 }
 0x1b9   :  { %v149_v28 = vpop.xlane.xlu0 %148 }
 0x1ba   :  { %v152_v29 = vmul.f32 0.03125, %v149_v28  ;;  %v155_v30 = vmul.f32 %v153_v27, %v153_v27 }
 0x1bc   :  { %v154_v31 = vsub.f32 %v143_v23, %v152_v29  ;;  %v157_v32 = vsel %vm89_vm1, %v155_v30, 0.0 }
 0x1bd   :  { %158 = vadd.xlane.f32.xlu1 %v157_v32 }
 0x1be   :  { %v156_v33 = vmul.f32 %v154_v31, %v154_v31 }
 0x1c0   :  { %v160_v34 = vsel %vm89_vm1, %v156_v33, 0.0 }
 0x1c1   :  { %161 = vadd.xlane.f32.xlu1 %v160_v34 }
 0x24a   :  { %v159_v40 = vpop.xlane.xlu1 %158 }
 0x24b   :  { %v163_v41 = vmul.f32 0.03125, %v159_v40 }
 0x24d   :  { %v165_v42 = vadd.f32 1e-12, %v163_v41 }
 0x24e   :  { %v162_v43 = vpop.xlane.xlu1 %161 }
 0x24f   :  { %v164_v44 = vmul.f32 0.03125, %v162_v43  ;;  %321 = vrsqrt.f32 %v165_v42 }
 0x251   :  { %v166_v45 = vadd.f32 1e-12, %v164_v44 }
 0x253   :  { %323 = vrsqrt.f32 %v166_v45 }
 0x259   :  { %v322_v46 = vpop.eup %321 }
 0x25a   :  { %v169_v48 = vmul.f32 %v322_v46, %v153_v27 }
 0x25d   :  { %v324_v47 = vpop.eup %323 }
 0x25e   :  { %v170_v49 = vmul.f32 %v324_v47, %v154_v31 }
 0x260   :  { %v171_v50 = vpack.c.bf16 %v170_v49, %v169_v48 }
 0x262   :  { %284 = vmatmul.mubr.msk.bf16.vlgmr.msra.gmra.mrb[0].mxu1 %vm89_vm1, %v171_v50 }
 0x335   :  { %v245_v58 = vpop.f32.mrb[0].mxu1 }
 0x336   :  { %v246_v59 = vadd.f32 %v245_v58, %v181_v56  ;;  %v247_v60 = vpop.f32.mrb[1].mxu1 }
 0x337   :  { %v248_v61 = vadd.f32 %v247_v60, %v185_v57  ;;  %v249_v62 = vpop.f32.mrb[2].mxu1 }
 0x338   :  { %254 = vst [vmem:[#allocation8] sm:$0xff] %v246_v59  ;;  %v250_v63 = vadd.f32 %v249_v62, %v181_v56  ;;  %v251_v0 = vpop.f32.mrb[3].mxu1 }
 0x339   :  { %255 = vst [vmem:[#allocation8 + $0x8] sm:$0xff] %v248_v61  ;;  %v252_v1 = vadd.f32 %v251_v0, %v185_v57 }
 0x33a   :  { %256 = vst [vmem:[#allocation8 + $0x10] sm:$0xff] %v250_v63 }
 0x33b   :  { %257 = vst [vmem:[#allocation8 + $0x18] sm:$0xff] %v252_v1 }
 0x33c   :  { %402 = shalt.err (!%p399_p0)
}
 0x33d   :  { %s403_s12 = scalar_lea.hbm %s527_s5, 512 }
 0x33e   :  { %p404_p1 = scmp.ne.s32.totalorder %s527_s5, %s403_s12  ;;  %p407_p2 = scmp.lt.u32.totalorder %s403_s12, %s527_s5 }
 0x340   :  { %p409_p3 = pnand %p407_p2, %p404_p1 }
 0x342   :  { %412 = shalt.err (!%p409_p3)
}
 0x343   :  { %s430_s1 = smov 256   ;;  %s431_s17 = smov 16  }
 0x344   :  { %269 = dma.vmem_to_hbm [thread:$0]  %s264_s9, 512, %s527_s5, [#allocation4], %s430_s1, %s430_s1, %s431_s17  }
 0x345   :  { %417 = dma.done.wait [#allocation4], 512  }
 0x346   :  { %418 = vsyncadd [#allocation4], 4294966784 }
 0x347   :  { %273 = vsyncpa [#allocation3], 1 }
 0x348   :  { %274 = vsyncpa [#allocation6], 1 }
 0x349   :  { %275 = vsyncpa [#allocation4], 1 }

</bundles_post_ra>
